<compile_context>
chip_gen: v5e
topology: v5e:2x2
jax: 0.10.0
libtpu: 0.0.40
codegen_flags: <defaults>
</compile_context>

<pallas_src>
import jax
import jax.numpy as jnp
from jax.experimental import pallas as pl
from jax.experimental.pallas import tpu as pltpu
import numpy as np

IN_FEATURES = 256
OUT_FEATURES = 3
TM_MAX = 4096  # batch tile; ~4 MiB f32 x-tile, x2 double-buffered ~8 MiB VMEM


def _round_up(x, m):
    return ((x + m - 1) // m) * m


def linear_kernel(x_ref, w_ref, b_ref, o_ref):
    # x_ref: (TM, 256)  w_ref: (256, 3)  b_ref: (1, 3)  o_ref: (TM, 3)
    acc = jnp.dot(x_ref[...], w_ref[...], preferred_element_type=jnp.float32)
    o_ref[...] = (acc + b_ref[...]).astype(o_ref.dtype)


def classifier_forward(x, w_t, b2d):
    """x: (N, 256) f32; w_t: (256, 3) f32 (pre-transposed weight); b2d: (1, 3) f32.
    Returns (N, 3) f32, matching nn.Linear(256, 3)."""
    n = x.shape[0]
    # Tile size: multiple of 8 (f32 sublane constraint), capped at TM_MAX.
    tm = min(TM_MAX, _round_up(n, 8))
    grid = (pl.cdiv(n, tm),)

    out = pl.pallas_call(
        linear_kernel,
        out_shape=jax.ShapeDtypeStruct((n, OUT_FEATURES), jnp.float32),
        grid_spec=pl.GridSpec(
            grid=grid,
            in_specs=[
                # x is streamed tile-by-tile over the batch axis (double-buffered).
                pl.BlockSpec((tm, IN_FEATURES), lambda i: (i, 0)),
                # Weight and bias stay resident (constant index_map).
                pl.BlockSpec((IN_FEATURES, OUT_FEATURES), lambda i: (0, 0)),
                pl.BlockSpec((1, OUT_FEATURES), lambda i: (0, 0)),
            ],
            out_specs=pl.BlockSpec((tm, OUT_FEATURES), lambda i: (i, 0)),
        ),
        compiler_params=pltpu.CompilerParams(
            # Batch tiles are independent -> shard across TCs on v7x megacore.
            dimension_semantics=("parallel",),
        ),
        cost_estimate=pl.CostEstimate(
            flops=2 * n * IN_FEATURES * OUT_FEATURES,
            transcendentals=0,
            bytes_accessed=(n * IN_FEATURES + IN_FEATURES * OUT_FEATURES
                            + OUT_FEATURES + n * OUT_FEATURES) * 4,
        ),
    )(x, w_t, b2d)
    return out


def init_params(key):
    """Init matching the PyTorch module spec:
    torch.nn.init.kaiming_uniform_(weight) with defaults (a=0, fan_in mode,
    gain=sqrt(2) -> bound = sqrt(6/fan_in)), and bias filled with 0."""
    fan_in = IN_FEATURES
    bound = np.sqrt(2.0) * np.sqrt(3.0 / fan_in)  # = sqrt(6 / fan_in)
    w = jax.random.uniform(
        key, (OUT_FEATURES, IN_FEATURES), dtype=jnp.float32,
        minval=-bound, maxval=bound)
    b = jnp.zeros((OUT_FEATURES,), dtype=jnp.float32)

    # Pre-transpose once so the kernel does a plain row-major MXU matmul.
    w_t = jnp.asarray(w.T)                 # (256, 3)
    b2d = b.reshape(1, OUT_FEATURES)       # (1, 3)
    return w, b, w_t, b2d


if __name__ == "__main__":
    key = jax.random.PRNGKey(0)
    k_w, k_x1, k_x2 = jax.random.split(key, 3)

    w, b, w_t, b2d = init_params(k_w)

    # Small batch, consistent with Linear(256, 3).
    batch = 8
    x = jax.random.normal(k_x1, (batch, IN_FEATURES), dtype=jnp.float32)
    out = jax.block_until_ready(classifier_forward(x, w_t, b2d))
    ref = x @ w.T + b
    np.testing.assert_allclose(np.asarray(out), np.asarray(ref),
                               rtol=1e-5, atol=1e-5)
    assert out.shape == (batch, OUT_FEATURES)

    # Secondary check: exercises a multi-tile grid with a partial last block
    # (batch2=4100 -> tm=4096, grid=(2,), last block has 4 valid rows).
    batch2 = 4100
    x2 = jax.random.normal(k_x2, (batch2, IN_FEATURES), dtype=jnp.float32)
    out2 = jax.block_until_ready(classifier_forward(x2, w_t, b2d))
    ref2 = x2 @ w.T + b
    np.testing.assert_allclose(np.asarray(out2), np.asarray(ref2),
                               rtol=1e-5, atol=1e-5)
    assert out2.shape == (batch2, OUT_FEATURES)

    print("KERNEL_OK")
</pallas_src>

<mosaic_0001>
module attributes {stable_mosaic.version = 11 : i64} {
  func.func @linear_kernel(%arg0: i32, %arg1: memref<8x256xf32, #tpu.memory_space<vmem>>, %arg2: memref<256x3xf32, #tpu.memory_space<vmem>>, %arg3: memref<1x3xf32, #tpu.memory_space<vmem>>, %arg4: memref<8x3xf32, #tpu.memory_space<vmem>>) attributes {dimension_semantics = [#tpu.dimension_semantics<parallel>], iteration_bounds = array<i64: 1>, scalar_prefetch = 0 : i64, scratch_operands = 0 : i64, tpu.core_type = #tpu.core_type<tc>, window_params = [{transform_indices = @transform_0, window_bounds = array<i64: 8, 256>}, {pipeline_mode = #tpu.pipeline_mode<synchronous>, transform_indices = @transform_1, window_bounds = array<i64: 256, 3>}, {pipeline_mode = #tpu.pipeline_mode<synchronous>, transform_indices = @transform_2, window_bounds = array<i64: 1, 3>}, {transform_indices = @transform_3, window_bounds = array<i64: 8, 3>}]} {
    %c0 = arith.constant 0 : index
    %c0_0 = arith.constant 0 : index
    %0 = vector.load %arg1[%c0, %c0_0] : memref<8x256xf32, #tpu.memory_space<vmem>>, vector<8x256xf32>
    %c0_1 = arith.constant 0 : index
    %c0_2 = arith.constant 0 : index
    %1 = vector.load %arg2[%c0_1, %c0_2] : memref<256x3xf32, #tpu.memory_space<vmem>>, vector<256x3xf32>
    %cst = arith.constant dense<0.000000e+00> : vector<8x3xf32>
    %2 = tpu.matmul %0, %1, %cst {dimension_numbers = #tpu.dot_dimension_numbers<[1], [0], [0], [1], [0, 0, 1, 1], [], []>} : vector<8x256xf32>, vector<256x3xf32>, vector<8x3xf32> -> vector<8x3xf32>
    %c0_3 = arith.constant 0 : index
    %c0_4 = arith.constant 0 : index
    %3 = vector.load %arg3[%c0_3, %c0_4] : memref<1x3xf32, #tpu.memory_space<vmem>>, vector<1x3xf32>
    %4 = vector.broadcast %3 : vector<1x3xf32> to vector<8x3xf32>
    %5 = arith.addf %2, %4 : vector<8x3xf32>
    %c0_5 = arith.constant 0 : index
    %c0_6 = arith.constant 0 : index
    %6 = vector.load %arg4[%c0_5, %c0_6] : memref<8x3xf32, #tpu.memory_space<vmem>>, vector<8x3xf32>
    tpu.vector_store %arg4[%c0_5, %c0_6], %5 {strides = array<i32>} : memref<8x3xf32, #tpu.memory_space<vmem>>, vector<8x3xf32>,
    return
  }
  func.func @transform_0(%arg0: i32) -> (i32, i32) {
    %c0_i32 = arith.constant 0 : i32
    %c0_i32_0 = arith.constant 0 : i32
    return %arg0, %c0_i32 : i32, i32
  }
  func.func @transform_1(%arg0: i32) -> (i32, i32) {
    %c0_i32 = arith.constant 0 : i32
    %c0_i32_0 = arith.constant 0 : i32
    %c0_i32_1 = arith.constant 0 : i32
    return %c0_i32, %c0_i32_0 : i32, i32
  }
  func.func @transform_2(%arg0: i32) -> (i32, i32) {
    %c0_i32 = arith.constant 0 : i32
    %c0_i32_0 = arith.constant 0 : i32
    %c0_i32_1 = arith.constant 0 : i32
    return %c0_i32, %c0_i32_0 : i32, i32
  }
  func.func @transform_3(%arg0: i32) -> (i32, i32) {
    %c0_i32 = arith.constant 0 : i32
    %c0_i32_0 = arith.constant 0 : i32
    return %arg0, %c0_i32 : i32, i32
  }
}

</mosaic_0001>

<bundles_post_ra>
// kernel: tpu_custom_call.1
= control target key start
LH: loop header
LB: loop body
LE: loop exit
PB: predicated region body
PF: predicated region fallthrough
CT: control target
= control target key end

     0   :  { %vm92_vm0 = vcmask 23552   ;;  %s227_s1 = inlined_call_operand.vmem [shape: f32[256,3], index: 1, kind: input, shape index: {}]   ;;  %s228_s2 = inlined_call_operand.vmem [shape: f32[1,3], index: 2, kind: input, shape index: {}]   ;;  %s229_s0 = inlined_call_operand.vmem [shape: f32[8,256], index: 0, kind: input, shape index: {}]   ;;  %s230_s3 = inlined_call_operand.vmem [shape: f32[8,3], index: 3, kind: output, shape index: {}]  }
   0x1   :  { %v31_v0 = vld [vmem:[%s227_s1 + $0x78] sm:$0xff]  ;;  %v30_v1 = vld [vmem:[%s227_s1 + $0x70] sm:$0xff]  ;;  %v29_v4 = vld [vmem:[%s227_s1 + $0x68] sm:$0xff] }
   0x2   :  { %v47_v2 = vld [vmem:[%s227_s1 + $0xf8] sm:$0xff]  ;;  %52 = vmatpush.msra.mxu0 %v31_v0  ;;  %v46_v3 = vld [vmem:[%s227_s1 + $0xf0] sm:$0xff]  ;;  %v45_v5 = vld [vmem:[%s227_s1 + $0xe8] sm:$0xff] }
   0x3   :  { %72 = vmatpush.msra.mxu1 %v47_v2  ;;  %v28_v6 = vld [vmem:[%s227_s1 + $0x60] sm:$0xff]  ;;  %v27_v8 = vld [vmem:[%s227_s1 + $0x58] sm:$0xff]  ;;  %v26_v10 = vld [vmem:[%s227_s1 + $0x50] sm:$0xff] }
   0x4   :  { %53 = vmatpush.msra.mxu0 %v30_v1  ;;  %v44_v7 = vld [vmem:[%s227_s1 + $0xe0] sm:$0xff]  ;;  %v43_v9 = vld [vmem:[%s227_s1 + $0xd8] sm:$0xff]  ;;  %v42_v11 = vld [vmem:[%s227_s1 + $0xd0] sm:$0xff] }
   0x5   :  { %73 = vmatpush.msra.mxu1 %v46_v3  ;;  %v25_v12 = vld [vmem:[%s227_s1 + $0x48] sm:$0xff]  ;;  %v24_v14 = vld [vmem:[%s227_s1 + $0x40] sm:$0xff]  ;;  %v23_v16 = vld [vmem:[%s227_s1 + $0x38] sm:$0xff] }
   0x6   :  { %54 = vmatpush.msra.mxu0 %v29_v4  ;;  %v41_v13 = vld [vmem:[%s227_s1 + $0xc8] sm:$0xff]  ;;  %v40_v15 = vld [vmem:[%s227_s1 + $0xc0] sm:$0xff]  ;;  %v39_v17 = vld [vmem:[%s227_s1 + $0xb8] sm:$0xff] }
   0x7   :  { %74 = vmatpush.msra.mxu1 %v45_v5  ;;  %v22_v18 = vld [vmem:[%s227_s1 + $0x30] sm:$0xff]  ;;  %v21_v20 = vld [vmem:[%s227_s1 + $0x28] sm:$0xff]  ;;  %v20_v22 = vld [vmem:[%s227_s1 + $0x20] sm:$0xff] }
   0x8   :  { %55 = vmatpush.msra.mxu0 %v28_v6  ;;  %v38_v19 = vld [vmem:[%s227_s1 + $0xb0] sm:$0xff]  ;;  %v37_v21 = vld [vmem:[%s227_s1 + $0xa8] sm:$0xff]  ;;  %v36_v23 = vld [vmem:[%s227_s1 + $0xa0] sm:$0xff] }
   0x9   :  { %75 = vmatpush.msra.mxu1 %v44_v7  ;;  %v19_v24 = vld [vmem:[%s227_s1 + $0x18] sm:$0xff]  ;;  %v18_v26 = vld [vmem:[%s227_s1 + $0x10] sm:$0xff]  ;;  %v17_v28 = vld [vmem:[%s227_s1 + $0x8] sm:$0xff] }
   0xa   :  { %56 = vmatpush.msra.mxu0 %v27_v8  ;;  %v35_v25 = vld [vmem:[%s227_s1 + $0x98] sm:$0xff]  ;;  %v34_v27 = vld [vmem:[%s227_s1 + $0x90] sm:$0xff]  ;;  %v33_v29 = vld [vmem:[%s227_s1 + $0x88] sm:$0xff] }
   0xb   :  { %76 = vmatpush.msra.mxu1 %v43_v9  ;;  %v16_v30 = vld [vmem:[%s227_s1] sm:$0xff]  ;;  %v15_v33 = vld [vmem:[%s229_s0 + $0x8] sm:$0xff] }
   0xc   :  { %57 = vmatpush.msra.mxu0 %v26_v10  ;;  %v32_v31 = vld [vmem:[%s227_s1 + $0x80] sm:$0xff] }
   0xd   :  { %77 = vmatpush.msra.mxu1 %v42_v11  ;;  %v14_v32 = vld [vmem:[%s229_s0] sm:$0xff] }
   0xe   :  { %58 = vmatpush.msra.mxu0 %v25_v12  ;;  %v98_v34 = vld [vmem:[%s228_s2] ss:$0 sm:$0xff] }
   0xf   :  { %78 = vmatpush.msra.mxu1 %v41_v13 }
  0x10   :  { %59 = vmatpush.msra.mxu0 %v24_v14 }
  0x11   :  { %79 = vmatpush.msra.mxu1 %v40_v15 }
  0x12   :  { %60 = vmatpush.msra.mxu0 %v23_v16 }
  0x13   :  { %80 = vmatpush.msra.mxu1 %v39_v17 }
  0x14   :  { %61 = vmatpush.msra.mxu0 %v22_v18 }
  0x15   :  { %81 = vmatpush.msra.mxu1 %v38_v19 }
  0x16   :  { %62 = vmatpush.msra.mxu0 %v21_v20 }
  0x17   :  { %82 = vmatpush.msra.mxu1 %v37_v21 }
  0x18   :  { %63 = vmatpush.msra.mxu0 %v20_v22 }
  0x19   :  { %83 = vmatpush.msra.mxu1 %v36_v23 }
  0x1a   :  { %64 = vmatpush.msra.mxu0 %v19_v24 }
  0x1b   :  { %84 = vmatpush.msra.mxu1 %v35_v25 }
  0x1c   :  { %65 = vmatpush.msra.mxu0 %v18_v26 }
  0x1d   :  { %85 = vmatpush.msra.mxu1 %v34_v27 }
  0x1e   :  { %66 = vmatpush.msra.mxu0 %v17_v28 }
  0x1f   :  { %86 = vmatpush.msra.mxu1 %v33_v29 }
  0x20   :  { %67 = vmatpush.msra.mxu0 %v16_v30 }
  0x21   :  { %87 = vmatpush.msra.mxu1 %v32_v31  ;;  %68 = vmatmul.f32.vlgmr.msra.gmra.mxu0 %v14_v32 }
  0x22   :  { %88 = vmatmul.f32.vlgmr.msra.gmra.mxu1 %v15_v33 }
  0x9e   :  { %v69_v35 = vpop.f32.mrf.mxu0 }
  0x9f   :  { %v89_v36 = vpop.f32.mrf.mxu1  ;;  %v70_v37 = vadd.f32 %v98_v34, %v69_v35 }
  0xa1   :  { %v90_v38 = vadd.f32 %v89_v36, %v70_v37 }
  0xa3   :  { %93 = vst.msk [vmem:[%s230_s3] sm:$0xff] %vm92_vm0, %v90_v38 }

</bundles_post_ra>
